<compile_context>
chip_gen: v5e
topology: v5e:2x2
jax: 0.10.0
libtpu: 0.0.40
codegen_flags: <defaults>
</compile_context>

<pallas_src>
import functools

import jax
import jax.numpy as jnp
from jax.experimental import pallas as pl
from jax.experimental.pallas import tpu as pltpu


# ----------------------------------------------------------------------------
# Shared excitation math (2D, per batch element): y (C,1) -> scale (C,1).
# ----------------------------------------------------------------------------
def _excitation2d(y, w1t_ref, b1_ref, w2_ref, b2_ref):
    # Linear(C -> Cr): contract over channels (sublane reduce, XLU) -> (1, Cr)
    h = jnp.sum(y * w1t_ref[...], axis=0, keepdims=True) + b1_ref[...]
    h = jnp.maximum(h, 0.0)                                      # ReLU
    # Linear(Cr -> C): contract over Cr (lane reduce, XLU)          -> (C, 1)
    z = jnp.sum(h * w2_ref[...], axis=1, keepdims=True) + b2_ref[...]
    # Sigmoid: exp AND the reciprocal both go to the EUP slot (VALU stays free)
    return pl.reciprocal(1.0 + jnp.exp(-z), approx=True)


# ----------------------------------------------------------------------------
# FUSED kernel: one grid step handles a (bb, C, S) batch block.
# ----------------------------------------------------------------------------
def _ca_fused_kernel(x_ref, w1t_ref, b1_ref, w2_ref, b2_ref, o_ref, *, inv_n, bb):
    for b in range(bb):  # tiny static unroll over batch rows in the block
        # Pool: read x only for the reduction (don't keep the slab live across
        # the MLP -- vreg pressure stays flat as the spatial tile grows).
        y = jnp.sum(x_ref[b].astype(jnp.float32), axis=1, keepdims=True) * inv_n
        s = _excitation2d(y, w1t_ref, b1_ref, w2_ref, b2_ref)       # (C, 1)
        # Rescale: re-read x (cheap VMEM re-load, 3 vld/cycle) and store.
        o_ref[b] = (x_ref[b].astype(jnp.float32) * s).astype(o_ref.dtype)


# ----------------------------------------------------------------------------
# S-TILED pass 1: chunked pool over the spatial grid axis + MLP -> scale.
#   grid = (B, S_tiles); spatial axis is the reduction ("arbitrary") axis.
# ----------------------------------------------------------------------------
def _ca_scale_kernel(x_ref, w1t_ref, b1_ref, w2_ref, b2_ref, scale_ref, acc_ref,
                     *, inv_n):
    s_idx = pl.program_id(1)

    @pl.when(s_idx == 0)
    def _init():
        acc_ref[...] = jnp.zeros_like(acc_ref)

    # chunked (two-stage) f32 sum over the spatial axis -> (C, 1)
    acc_ref[...] += jnp.sum(x_ref[0].astype(jnp.float32), axis=1, keepdims=True)

    @pl.when(s_idx == pl.num_programs(1) - 1)
    def _finish():
        scale_ref[0] = _excitation2d(acc_ref[...] * inv_n,
                                     w1t_ref, b1_ref, w2_ref, b2_ref)


# ----------------------------------------------------------------------------
# S-TILED pass 2: lane-tiled per-channel rescale.
# ----------------------------------------------------------------------------
def _ca_rescale_kernel(x_ref, scale_ref, o_ref):
    o_ref[...] = (x_ref[...].astype(jnp.float32) * scale_ref[...]).astype(o_ref.dtype)


# ----------------------------------------------------------------------------
# Host-side helpers.
# ----------------------------------------------------------------------------
def _tensorcores_per_chip():
    try:
        kind = jax.devices()[0].device_kind.lower()
    except Exception:
        return 1
    return 2 if ("v7" in kind or "tpu7" in kind) else 1


def _vmem_budget_bytes():
    try:
        return int(pltpu.get_tpu_info().vmem_capacity_bytes)
    except Exception:
        return 64 * 1024 * 1024  # v7x physical VMEM -- the most conservative


def _pick_spatial_tile(S, max_elems):
    """Largest divisor of S that fits, preferring lane-aligned (x128) tiles."""
    max_elems = max(1, min(S, max_elems))
    fallback = 1
    for t in range(max_elems, 0, -1):
        if S % t == 0:
            if t % 128 == 0:
                return t
            if fallback == 1:
                fallback = t
    return fallback


# ----------------------------------------------------------------------------
# Forward pass.
# ----------------------------------------------------------------------------
def ca_forward(x, params, *, donate_input=False, force_tiled=False, tile_s=None):
    """x: (B, C, D, H, W), f32 or bf16 (NCDHW).  Returns same shape/dtype."""
    B, C, D, H, W = x.shape
    S = D * H * W
    Cr = params["w1t"].shape[1]
    x2 = x.reshape(B, C, S)  # contiguous trailing dims -> free reshape
    w1t, b1, w2, b2 = params["w1t"], params["b1"], params["w2"], params["b2"]
    itemsize = jnp.dtype(x.dtype).itemsize

    budget = _vmem_budget_bytes()
    cores = _tensorcores_per_chip()
    alias = {0: 0} if donate_input else {}

    # Batch blocking: 1 grid step on single-TC parts (v5e/v6e), 2 parallel
    # steps on v7x so both TensorCores get work.
    nb = max(1, min(B, cores))
    bb = -(-B // nb)
    nb = -(-B // bb)

    fused_block_bytes = bb * C * S * itemsize
    fused_vmem_need = 4 * fused_block_bytes + 64 * 1024  # 2x in + 2x out + weights

    if not force_tiled and fused_vmem_need <= (budget * 3) // 4:
        out = pl.pallas_call(
            functools.partial(_ca_fused_kernel, inv_n=1.0 / S, bb=bb),
            out_shape=jax.ShapeDtypeStruct((B, C, S), x.dtype),
            grid=(nb,),
            in_specs=[
                pl.BlockSpec((bb, C, S), lambda b: (b, 0, 0)),
                pl.BlockSpec((C, Cr), lambda b: (0, 0)),
                pl.BlockSpec((1, Cr), lambda b: (0, 0)),
                pl.BlockSpec((C, Cr), lambda b: (0, 0)),
                pl.BlockSpec((C, 1), lambda b: (0, 0)),
            ],
            out_specs=pl.BlockSpec((bb, C, S), lambda b: (b, 0, 0)),
            input_output_aliases=alias,
            compiler_params=pltpu.CompilerParams(
                dimension_semantics=("parallel",),
                vmem_limit_bytes=int(min(max(2 * fused_vmem_need, 32 << 20), budget)),
            ),
        )(x2, w1t, b1, w2, b2)
        return out.reshape(B, C, D, H, W)

    # ---- S-tiled fallback for large spatial volumes -------------------------
    if tile_s is None:
        tile_s = _pick_spatial_tile(S, max(128, (8 << 20) // (C * itemsize)))
    assert S % tile_s == 0, "spatial tile must divide D*H*W"
    ns = S // tile_s

    # Pass 1: chunked pool + MLP + sigmoid -> per-(batch, channel) scale.
    scale = pl.pallas_call(
        functools.partial(_ca_scale_kernel, inv_n=1.0 / S),
        out_shape=jax.ShapeDtypeStruct((B, C, 1), jnp.float32),
        grid=(B, ns),
        in_specs=[
            pl.BlockSpec((1, C, tile_s), lambda b, s: (b, 0, s)),
            pl.BlockSpec((C, Cr), lambda b, s: (0, 0)),
            pl.BlockSpec((1, Cr), lambda b, s: (0, 0)),
            pl.BlockSpec((C, Cr), lambda b, s: (0, 0)),
            pl.BlockSpec((C, 1), lambda b, s: (0, 0)),
        ],
        out_specs=pl.BlockSpec((1, C, 1), lambda b, s: (b, 0, 0)),
        scratch_shapes=[pltpu.VMEM((C, 1), jnp.float32)],
        compiler_params=pltpu.CompilerParams(
            dimension_semantics=("parallel", "arbitrary")),
    )(x2, w1t, b1, w2, b2)

    # Pass 2: lane-tiled per-channel rescale.
    out = pl.pallas_call(
        _ca_rescale_kernel,
        out_shape=jax.ShapeDtypeStruct((B, C, S), x.dtype),
        grid=(B, ns),
        in_specs=[
            pl.BlockSpec((1, C, tile_s), lambda b, s: (b, 0, s)),
            pl.BlockSpec((1, C, 1), lambda b, s: (b, 0, 0)),
        ],
        out_specs=pl.BlockSpec((1, C, tile_s), lambda b, s: (b, 0, s)),
        input_output_aliases=alias,
        compiler_params=pltpu.CompilerParams(
            dimension_semantics=("parallel", "parallel")),
    )(x2, scale)
    return out.reshape(B, C, D, H, W)


# ----------------------------------------------------------------------------
# Pure-JAX reference (mirrors the PyTorch CA.forward) for correctness check.
# ----------------------------------------------------------------------------
def ca_reference(x, params):
    B, C = x.shape[:2]
    y = jnp.mean(x.reshape(B, C, -1).astype(jnp.float32), axis=-1)  # (B, C)
    h = jnp.maximum(y @ params["w1t"] + params["b1"], 0.0)          # (B, Cr)
    z = jax.nn.sigmoid(h @ params["w2"].T + params["b2"].reshape(1, C))
    return (x.astype(jnp.float32) * z.reshape(B, C, 1, 1, 1)).astype(x.dtype)


# ----------------------------------------------------------------------------
# Deterministic parameter init (PyTorch nn.Linear default: U(-1/sqrt(fan_in)))
# ----------------------------------------------------------------------------
def init_params(key, in_channels=32, ratio=16):
    C, Cr = in_channels, in_channels // ratio
    k1, k2, k3, k4 = jax.random.split(key, 4)

    def uni(k, shape, fan_in):
        bound = 1.0 / (fan_in ** 0.5)
        return jax.random.uniform(k, shape, jnp.float32, -bound, bound)

    return dict(
        w1t=uni(k1, (C, Cr), C),   # Linear(C->Cr) weight, stored transposed
        b1=uni(k2, (1, Cr), C),
        w2=uni(k3, (C, Cr), Cr),   # Linear(Cr->C) weight, natural (out,in)
        b2=uni(k4, (C, 1), Cr),
    )


if __name__ == "__main__":
    key = jax.random.PRNGKey(0)
    pkey, xkey = jax.random.split(key)

    B, C, D, H, W = 2, 32, 8, 8, 8  # ratio=16 -> hidden Cr=2, S=512
    params = init_params(pkey, in_channels=C, ratio=16)
    x = jax.random.normal(xkey, (B, C, D, H, W), jnp.float32)

    ref = ca_reference(x, params)

    # Fused single-pass path (default): 1 grid step on v5e/v6e, 2 on v7x.
    fused = jax.jit(ca_forward)
    out_fused = jax.block_until_ready(fused(x, params))
    assert out_fused.shape == x.shape and out_fused.dtype == x.dtype
    # Sigmoid uses the approximate EUP reciprocal (~1e-4 rel); allow 2e-3.
    assert jnp.allclose(out_fused, ref, atol=2e-3, rtol=2e-3), "fused mismatch"

    # S-tiled fallback path (large-S design), exercised with a forced tile.
    tiled = jax.jit(functools.partial(ca_forward, force_tiled=True, tile_s=128))
    out_tiled = jax.block_until_ready(tiled(x, params))
    assert jnp.allclose(out_tiled, ref, atol=2e-3, rtol=2e-3), "tiled mismatch"

    print("KERNEL_OK")
</pallas_src>

<mosaic_0001>
module attributes {stable_mosaic.version = 11 : i64} {
  func.func @_ca_fused_kernel(%arg0: i32, %arg1: memref<2x32x512xf32, #tpu.memory_space<vmem>>, %arg2: memref<32x2xf32, #tpu.memory_space<vmem>>, %arg3: memref<1x2xf32, #tpu.memory_space<vmem>>, %arg4: memref<32x2xf32, #tpu.memory_space<vmem>>, %arg5: memref<32x1xf32, #tpu.memory_space<vmem>>, %arg6: memref<2x32x512xf32, #tpu.memory_space<vmem>>) attributes {dimension_semantics = [#tpu.dimension_semantics<parallel>], iteration_bounds = array<i64: 1>, scalar_prefetch = 0 : i64, scratch_operands = 0 : i64, tpu.core_type = #tpu.core_type<tc>, window_params = [{transform_indices = @transform_0, window_bounds = array<i64: 2, 32, 512>}, {pipeline_mode = #tpu.pipeline_mode<synchronous>, transform_indices = @transform_1, window_bounds = array<i64: 32, 2>}, {pipeline_mode = #tpu.pipeline_mode<synchronous>, transform_indices = @transform_2, window_bounds = array<i64: 1, 2>}, {pipeline_mode = #tpu.pipeline_mode<synchronous>, transform_indices = @transform_3, window_bounds = array<i64: 32, 2>}, {pipeline_mode = #tpu.pipeline_mode<synchronous>, transform_indices = @transform_4, window_bounds = array<i64: 32, 1>}, {transform_indices = @transform_5, window_bounds = array<i64: 2, 32, 512>}]} {
    %c0 = arith.constant 0 : index
    %c0_0 = arith.constant 0 : index
    %c0_1 = arith.constant 0 : index
    %0 = vector.load %arg1[%c0, %c0_0, %c0_1] : memref<2x32x512xf32, #tpu.memory_space<vmem>>, vector<1x32x512xf32>
    %1 = vector.shape_cast %0 : vector<1x32x512xf32> to vector<32x512xf32>
    %cst = arith.constant dense<0.000000e+00> : vector<32xf32>
    %2 = vector.multi_reduction <add>, %1, %cst [1] : vector<32x512xf32> to vector<32xf32>
    %3 = vector.shape_cast %2 : vector<32xf32> to vector<32x1xf32>
    %cst_2 = arith.constant 0.001953125 : f32
    %4 = vector.broadcast %cst_2 : f32 to vector<32x1xf32>
    %5 = arith.mulf %3, %4 : vector<32x1xf32>
    %c0_3 = arith.constant 0 : index
    %c0_4 = arith.constant 0 : index
    %6 = vector.load %arg2[%c0_3, %c0_4] : memref<32x2xf32, #tpu.memory_space<vmem>>, vector<32x2xf32>
    %7 = vector.broadcast %5 : vector<32x1xf32> to vector<32x2xf32>
    %8 = arith.mulf %7, %6 : vector<32x2xf32>
    %cst_5 = arith.constant dense<0.000000e+00> : vector<2xf32>
    %9 = vector.multi_reduction <add>, %8, %cst_5 [0] : vector<32x2xf32> to vector<2xf32>
    %10 = vector.shape_cast %9 : vector<2xf32> to vector<1x2xf32>
    %c0_6 = arith.constant 0 : index
    %c0_7 = arith.constant 0 : index
    %11 = vector.load %arg3[%c0_6, %c0_7] : memref<1x2xf32, #tpu.memory_space<vmem>>, vector<1x2xf32>
    %12 = arith.addf %10, %11 : vector<1x2xf32>
    %cst_8 = arith.constant 0.000000e+00 : f32
    %13 = vector.broadcast %cst_8 : f32 to vector<1x2xf32>
    %14 = arith.maximumf %12, %13 : vector<1x2xf32>
    %c0_9 = arith.constant 0 : index
    %c0_10 = arith.constant 0 : index
    %15 = vector.load %arg4[%c0_9, %c0_10] : memref<32x2xf32, #tpu.memory_space<vmem>>, vector<32x2xf32>
    %16 = vector.broadcast %14 : vector<1x2xf32> to vector<32x2xf32>
    %17 = arith.mulf %16, %15 : vector<32x2xf32>
    %cst_11 = arith.constant dense<0.000000e+00> : vector<32xf32>
    %18 = vector.multi_reduction <add>, %17, %cst_11 [1] : vector<32x2xf32> to vector<32xf32>
    %19 = vector.shape_cast %18 : vector<32xf32> to vector<32x1xf32>
    %c0_12 = arith.constant 0 : index
    %c0_13 = arith.constant 0 : index
    %20 = vector.load %arg5[%c0_12, %c0_13] : memref<32x1xf32, #tpu.memory_space<vmem>>, vector<32x1xf32>
    %21 = arith.addf %19, %20 : vector<32x1xf32>
    %cst_14 = arith.constant 0.000000e+00 : f32
    %22 = vector.broadcast %cst_14 : f32 to vector<32x1xf32>
    %23 = arith.subf %22, %21 : vector<32x1xf32>
    %24 = math.exp %23 : vector<32x1xf32>
    %cst_15 = arith.constant 1.000000e+00 : f32
    %25 = vector.broadcast %cst_15 : f32 to vector<32x1xf32>
    %26 = arith.addf %25, %24 : vector<32x1xf32>
    %27 = tpu.reciprocal %26 {approx = true} : vector<32x1xf32> -> vector<32x1xf32>
    %c0_16 = arith.constant 0 : index
    %c0_17 = arith.constant 0 : index
    %c0_18 = arith.constant 0 : index
    %28 = vector.load %arg1[%c0_16, %c0_17, %c0_18] : memref<2x32x512xf32, #tpu.memory_space<vmem>>, vector<1x32x512xf32>
    %29 = vector.shape_cast %28 : vector<1x32x512xf32> to vector<32x512xf32>
    %30 = vector.broadcast %27 : vector<32x1xf32> to vector<32x512xf32>
    %31 = arith.mulf %29, %30 : vector<32x512xf32>
    %c0_19 = arith.constant 0 : index
    %c0_20 = arith.constant 0 : index
    %c0_21 = arith.constant 0 : index
    %32 = vector.load %arg6[%c0_19, %c0_20, %c0_21] : memref<2x32x512xf32, #tpu.memory_space<vmem>>, vector<1x32x512xf32>
    %33 = vector.shape_cast %32 : vector<1x32x512xf32> to vector<32x512xf32>
    %34 = vector.shape_cast %31 : vector<32x512xf32> to vector<1x32x512xf32>
    tpu.vector_store %arg6[%c0_19, %c0_20, %c0_21], %34 {strides = array<i32>} : memref<2x32x512xf32, #tpu.memory_space<vmem>>, vector<1x32x512xf32>,
    %c1 = arith.constant 1 : index
    %c0_22 = arith.constant 0 : index
    %c0_23 = arith.constant 0 : index
    %35 = vector.load %arg1[%c1, %c0_22, %c0_23] : memref<2x32x512xf32, #tpu.memory_space<vmem>>, vector<1x32x512xf32>
    %36 = vector.shape_cast %35 : vector<1x32x512xf32> to vector<32x512xf32>
    %cst_24 = arith.constant dense<0.000000e+00> : vector<32xf32>
    %37 = vector.multi_reduction <add>, %36, %cst_24 [1] : vector<32x512xf32> to vector<32xf32>
    %38 = vector.shape_cast %37 : vector<32xf32> to vector<32x1xf32>
    %cst_25 = arith.constant 0.001953125 : f32
    %39 = vector.broadcast %cst_25 : f32 to vector<32x1xf32>
    %40 = arith.mulf %38, %39 : vector<32x1xf32>
    %c0_26 = arith.constant 0 : index
    %c0_27 = arith.constant 0 : index
    %41 = vector.load %arg2[%c0_26, %c0_27] : memref<32x2xf32, #tpu.memory_space<vmem>>, vector<32x2xf32>
    %42 = vector.broadcast %40 : vector<32x1xf32> to vector<32x2xf32>
    %43 = arith.mulf %42, %41 : vector<32x2xf32>
    %cst_28 = arith.constant dense<0.000000e+00> : vector<2xf32>
    %44 = vector.multi_reduction <add>, %43, %cst_28 [0] : vector<32x2xf32> to vector<2xf32>
    %45 = vector.shape_cast %44 : vector<2xf32> to vector<1x2xf32>
    %c0_29 = arith.constant 0 : index
    %c0_30 = arith.constant 0 : index
    %46 = vector.load %arg3[%c0_29, %c0_30] : memref<1x2xf32, #tpu.memory_space<vmem>>, vector<1x2xf32>
    %47 = arith.addf %45, %46 : vector<1x2xf32>
    %cst_31 = arith.constant 0.000000e+00 : f32
    %48 = vector.broadcast %cst_31 : f32 to vector<1x2xf32>
    %49 = arith.maximumf %47, %48 : vector<1x2xf32>
    %c0_32 = arith.constant 0 : index
    %c0_33 = arith.constant 0 : index
    %50 = vector.load %arg4[%c0_32, %c0_33] : memref<32x2xf32, #tpu.memory_space<vmem>>, vector<32x2xf32>
    %51 = vector.broadcast %49 : vector<1x2xf32> to vector<32x2xf32>
    %52 = arith.mulf %51, %50 : vector<32x2xf32>
    %cst_34 = arith.constant dense<0.000000e+00> : vector<32xf32>
    %53 = vector.multi_reduction <add>, %52, %cst_34 [1] : vector<32x2xf32> to vector<32xf32>
    %54 = vector.shape_cast %53 : vector<32xf32> to vector<32x1xf32>
    %c0_35 = arith.constant 0 : index
    %c0_36 = arith.constant 0 : index
    %55 = vector.load %arg5[%c0_35, %c0_36] : memref<32x1xf32, #tpu.memory_space<vmem>>, vector<32x1xf32>
    %56 = arith.addf %54, %55 : vector<32x1xf32>
    %cst_37 = arith.constant 0.000000e+00 : f32
    %57 = vector.broadcast %cst_37 : f32 to vector<32x1xf32>
    %58 = arith.subf %57, %56 : vector<32x1xf32>
    %59 = math.exp %58 : vector<32x1xf32>
    %cst_38 = arith.constant 1.000000e+00 : f32
    %60 = vector.broadcast %cst_38 : f32 to vector<32x1xf32>
    %61 = arith.addf %60, %59 : vector<32x1xf32>
    %62 = tpu.reciprocal %61 {approx = true} : vector<32x1xf32> -> vector<32x1xf32>
    %c1_39 = arith.constant 1 : index
    %c0_40 = arith.constant 0 : index
    %c0_41 = arith.constant 0 : index
    %63 = vector.load %arg1[%c1_39, %c0_40, %c0_41] : memref<2x32x512xf32, #tpu.memory_space<vmem>>, vector<1x32x512xf32>
    %64 = vector.shape_cast %63 : vector<1x32x512xf32> to vector<32x512xf32>
    %65 = vector.broadcast %62 : vector<32x1xf32> to vector<32x512xf32>
    %66 = arith.mulf %64, %65 : vector<32x512xf32>
    %c1_42 = arith.constant 1 : index
    %c0_43 = arith.constant 0 : index
    %c0_44 = arith.constant 0 : index
    %67 = vector.load %arg6[%c1_42, %c0_43, %c0_44] : memref<2x32x512xf32, #tpu.memory_space<vmem>>, vector<1x32x512xf32>
    %68 = vector.shape_cast %67 : vector<1x32x512xf32> to vector<32x512xf32>
    %69 = vector.shape_cast %66 : vector<32x512xf32> to vector<1x32x512xf32>
    tpu.vector_store %arg6[%c1_42, %c0_43, %c0_44], %69 {strides = array<i32>} : memref<2x32x512xf32, #tpu.memory_space<vmem>>, vector<1x32x512xf32>,
    return
  }
  func.func @transform_0(%arg0: i32) -> (i32, i32, i32) {
    %c0_i32 = arith.constant 0 : i32
    %c0_i32_0 = arith.constant 0 : i32
    %c0_i32_1 = arith.constant 0 : i32
    return %arg0, %c0_i32, %c0_i32_0 : i32, i32, i32
  }
  func.func @transform_1(%arg0: i32) -> (i32, i32) {
    %c0_i32 = arith.constant 0 : i32
    %c0_i32_0 = arith.constant 0 : i32
    %c0_i32_1 = arith.constant 0 : i32
    return %c0_i32, %c0_i32_0 : i32, i32
  }
  func.func @transform_2(%arg0: i32) -> (i32, i32) {
    %c0_i32 = arith.constant 0 : i32
    %c0_i32_0 = arith.constant 0 : i32
    %c0_i32_1 = arith.constant 0 : i32
    return %c0_i32, %c0_i32_0 : i32, i32
  }
  func.func @transform_3(%arg0: i32) -> (i32, i32) {
    %c0_i32 = arith.constant 0 : i32
    %c0_i32_0 = arith.constant 0 : i32
    %c0_i32_1 = arith.constant 0 : i32
    return %c0_i32, %c0_i32_0 : i32, i32
  }
  func.func @transform_4(%arg0: i32) -> (i32, i32) {
    %c0_i32 = arith.constant 0 : i32
    %c0_i32_0 = arith.constant 0 : i32
    %c0_i32_1 = arith.constant 0 : i32
    return %c0_i32, %c0_i32_0 : i32, i32
  }
  func.func @transform_5(%arg0: i32) -> (i32, i32, i32) {
    %c0_i32 = arith.constant 0 : i32
    %c0_i32_0 = arith.constant 0 : i32
    %c0_i32_1 = arith.constant 0 : i32
    return %arg0, %c0_i32, %c0_i32_0 : i32, i32, i32
  }
}

</mosaic_0001>

<bundles_post_ra>
// kernel: ca_forward.1
= control target key start
LH: loop header
LB: loop body
LE: loop exit
PB: predicated region body
PF: predicated region fallthrough
CT: control target
= control target key end

     0   :  { %vm68_vm0 = vcmask 15360   ;;  %s834_s0 = inlined_call_operand.vmem [shape: f32[2,32,512], index: 0, kind: input, shape index: {}]   ;;  %s835_s1 = inlined_call_operand.vmem [shape: f32[32,2], index: 1, kind: input, shape index: {}]   ;;  %s836_s2 = inlined_call_operand.vmem [shape: f32[1,2], index: 2, kind: input, shape index: {}]   ;;  %s837_s3 = inlined_call_operand.vmem [shape: f32[32,2], index: 3, kind: input, shape index: {}]   ;;  %s838_s4 = inlined_call_operand.vmem [shape: f32[32,1], index: 4, kind: input, shape index: {}]   ;;  %s839_s5 = inlined_call_operand.vmem [shape: f32[2,32,512], index: 5, kind: output, shape index: {}]  }
   0x1   :  { %v459_v0 = vld [vmem:[%s834_s0 + $0x80] sm:$0xff]  ;;  %v464_v1 = vld [vmem:[%s834_s0 + $0x88] sm:$0xff]  ;;  %v469_v2 = vld [vmem:[%s834_s0 + $0x90] sm:$0xff] }
   0x2   :  { %v203_v3 = vadd.f32 %v464_v1, %v459_v0  ;;  %v476_v4 = vld [vmem:[%s834_s0] sm:$0xff]  ;;  %v481_v5 = vld [vmem:[%s834_s0 + $0x8] sm:$0xff]  ;;  %v486_v6 = vld [vmem:[%s834_s0 + $0x98] sm:$0xff] }
   0x3   :  { %v491_v7 = vld [vmem:[%s834_s0 + $0x10] sm:$0xff]  ;;  %v36_v8 = vadd.f32 %v481_v5, %v476_v4  ;;  %v498_v9 = vld [vmem:[%s834_s0 + $0x40] sm:$0xff]  ;;  %v504_v11 = vld [vmem:[%s834_s0 + $0x18] sm:$0xff] }
   0x4   :  { %v204_v10 = vadd.f32 %v469_v2, %v203_v3  ;;  %v509_v12 = vld [vmem:[%s834_s0 + $0x48] sm:$0xff]  ;;  %v514_v13 = vld [vmem:[%s834_s0 + $0x50] sm:$0xff]  ;;  %v522_v16 = vld [vmem:[%s834_s0 + $0xa0] sm:$0xff] }
   0x5   :  { %v37_v14 = vadd.f32 %v36_v8, %v491_v7  ;;  %v46_v15 = vadd.f32 %v509_v12, %v498_v9  ;;  %v527_v17 = vld [vmem:[%s834_s0 + $0xa8] sm:$0xff]  ;;  %v532_v18 = vld [vmem:[%s834_s0 + $0xb0] sm:$0xff]  ;;  %v538_v20 = vld [vmem:[%s834_s0 + $0x58] sm:$0xff] }
   0x6   :  { %v205_v19 = vadd.f32 %v486_v6, %v204_v10  ;;  %v208_v21 = vadd.f32 %v527_v17, %v522_v16  ;;  %v545_v22 = vld [vmem:[%s834_s0 + $0x20] sm:$0xff]  ;;  %v550_v23 = vld [vmem:[%s834_s0 + $0x28] sm:$0xff]  ;;  %v557_v26 = vld [vmem:[%s834_s0 + $0x30] sm:$0xff] }
   0x7   :  { %v38_v24 = vadd.f32 %v37_v14, %v504_v11  ;;  %v47_v25 = vadd.f32 %v46_v15, %v514_v13  ;;  %v41_v27 = vadd.f32 %v550_v23, %v545_v22  ;;  %v564_v28 = vld [vmem:[%s834_s0 + $0xc0] sm:$0xff]  ;;  %v570_v30 = vld [vmem:[%s834_s0 + $0xc8] sm:$0xff]  ;;  %v575_v31 = vld [vmem:[%s834_s0 + $0xd0] sm:$0xff] }
   0x8   :  { %206 = vadd.xlane.f32.xlu1 %v205_v19  ;;  %v209_v29 = vadd.f32 %v532_v18, %v208_v21  ;;  %v581_v33 = vld [vmem:[%s834_s0 + $0xb8] sm:$0xff]  ;;  %v213_v35 = vadd.f32 %v570_v30, %v564_v28  ;;  %v589_v36 = vld [vmem:[%s834_s0 + $0xe0] sm:$0xff]  ;;  %v594_v37 = vld [vmem:[%s834_s0 + $0xe8] sm:$0xff] }
   0x9   :  { %39 = vadd.xlane.f32.xlu0 %v38_v24  ;;  %v48_v32 = vadd.f32 %v47_v25, %v538_v20  ;;  %v42_v34 = vadd.f32 %v41_v27, %v557_v26  ;;  %v599_v38 = vld [vmem:[%s834_s0 + $0x38] sm:$0xff]  ;;  %v604_v39 = vld [vmem:[%s834_s0 + $0x60] sm:$0xff]  ;;  %v609_v40 = vld [vmem:[%s834_s0 + $0x68] sm:$0xff]  ;;  %v218_v44 = vadd.f32 %v594_v37, %v589_v36 }
   0xa   :  { %v214_v41 = vadd.f32 %v575_v31, %v213_v35  ;;  %v210_v42 = vadd.f32 %v581_v33, %v209_v29  ;;  %v616_v43 = vld [vmem:[%s834_s0 + $0xd8] sm:$0xff]  ;;  %v624_v46 = vld [vmem:[%s834_s0 + $0xf0] sm:$0xff]  ;;  %v51_v47 = vadd.f32 %v609_v40, %v604_v39  ;;  %v227_v60 = vld [vmem:[%s835_s1] sm:$0xff] }
   0xb   :  { %49 = vadd.xlane.f32.xlu2 %v48_v32  ;;  %v43_v45 = vadd.f32 %v42_v34, %v599_v38  ;;  %v631_v48 = vld [vmem:[%s834_s0 + $0x70] sm:$0xff]  ;;  %v219_v50 = vadd.f32 %v624_v46, %v218_v44  ;;  %v638_v51 = vld [vmem:[%s834_s0 + $0xf8] sm:$0xff]  ;;  %v228_v62 = vld [vmem:[%s835_s1 + $0x8] sm:$0xff] }
   0xc   :  { %v215_v49 = vadd.f32 %v616_v43, %v214_v41  ;;  %v52_v52 = vadd.f32 %v51_v47, %v631_v48  ;;  %v644_v53 = vld [vmem:[%s834_s0 + $0x78] sm:$0xff]  ;;  %v62_v19 = vld [vmem:[%s835_s1 + $0x10] sm:$0xff] }
   0xd   :  { %v220_v54 = vadd.f32 %v638_v51, %v219_v50  ;;  %v230_v47 = vld [vmem:[%s835_s1 + $0x18] sm:$0xff] }
   0xe   :  { %v53_v55 = vadd.f32 %v52_v52, %v644_v53 }
  0x10   :  { %211 = vadd.xlane.f32.xlu1 %v210_v42 }
  0x11   :  { %44 = vadd.xlane.f32.xlu0 %v43_v45 }
  0x13   :  { %216 = vadd.xlane.f32.xlu2 %v215_v49 }
  0x18   :  { %221 = vadd.xlane.f32.xlu1 %v220_v54 }
  0x19   :  { %54 = vadd.xlane.f32.xlu0 %v53_v55 }
  0x7b   :  { %v207_v56 = vpop.xlane.xlu1 %206 }
  0x7c   :  { %v40_v57 = vpop.xlane.xlu0 %39  ;;  %v223_v59 = vmul.f32 0.001953125, %v207_v56 }
  0x7d   :  { %v56_v61 = vmul.f32 0.001953125, %v40_v57 }
  0x7e   :  { %v50_v58 = vpop.xlane.xlu2 %49  ;;  %v231_v3 = vmul.f32 %v227_v60, %v223_v59 }
  0x7f   :  { %v58_v14 = vmul.f32 0.001953125, %v50_v58  ;;  %v64_v25 = vmul.f32 %v227_v60, %v56_v61 }
  0x80   :  { %v235_v32 = vsel %vm68_vm0, %v231_v3, 0.0 }
  0x81   :  { %v66_v35 = vmul.f32 %v62_v19, %v58_v14  ;;  %v69_v44 = vsel %vm68_vm0, %v64_v25, 0.0 }
  0x83   :  { %v212_v63 = vpop.xlane.xlu1 %211  ;;  %v72_v56 = vsel %vm68_vm0, %v66_v35, 0.0  ;;  %v82_v35 = vld [vmem:[%s836_s2] sm:$0x1] }
  0x84   :  { %v224_v8 = vmul.f32 0.001953125, %v212_v63  ;;  %v45_v10 = vpop.xlane.xlu0 %44 }
  0x85   :  { %v57_v15 = vmul.f32 0.001953125, %v45_v10 }
  0x86   :  { %v232_v21 = vmul.f32 %v228_v62, %v224_v8  ;;  %v217_v24 = vpop.xlane.xlu2 %216 }
  0x87   :  { %v65_v27 = vmul.f32 %v228_v62, %v57_v15  ;;  %v225_v29 = vmul.f32 0.001953125, %v217_v24 }
  0x88   :  { %v236_v34 = vsel %vm68_vm0, %v232_v21, 0.0 }
  0x89   :  { %v70_v41 = vsel %vm68_vm0, %v65_v27, 0.0  ;;  %v233_v42 = vmul.f32 %v225_v29, %v62_v19  ;;  %v237_v45 = vadd.f32 %v236_v34, %v235_v32 }
  0x8a   :  { %v71_v50 = vadd.f32 %v70_v41, %v69_v44  ;;  %v248_v41 = vld [vmem:[%s836_s2] sm:$0x1] }
  0x8b   :  { %v222_v49 = vpop.xlane.xlu1 %221  ;;  %v238_v52 = vsel %vm68_vm0, %v233_v42, 0.0 }
  0x8c   :  { %v226_v54 = vmul.f32 0.001953125, %v222_v49  ;;  %v55_v55 = vpop.xlane.xlu0 %54  ;;  %v239_v59 = vadd.f32 %v238_v52, %v237_v45  ;;  %v73_v62 = vadd.f32 %v72_v56, %v71_v50  ;;  %v87_v49 = vld [vmem:[%s837_s3 + $0x10] sm:$0xff]  ;;  %v86_v50 = vld [vmem:[%s837_s3 + $0x8] sm:$0xff]  ;;  %v85_v52 = vld [vmem:[%s837_s3] sm:$0xff] }
  0x8d   :  { %v59_v57 = vmul.f32 0.001953125, %v55_v55 }
  0x8e   :  { %v234_v58 = vmul.f32 %v230_v47, %v226_v54 }
  0x8f   :  { %v67_v60 = vmul.f32 %v230_v47, %v59_v57 }
  0x90   :  { %v240_v61 = vsel %vm68_vm0, %v234_v58, 0.0 }
  0x91   :  { %v241_v63 = vadd.f32 %v240_v61, %v239_v59  ;;  %v74_v3 = vsel %vm68_vm0, %v67_v60, 0.0 }
  0x92   :  { %v75_v8 = vadd.f32 %v74_v3, %v73_v62 }
  0x93   :  { %v242_v10 = vrot.slane %v241_v63, 4 }
  0x94   :  { %v76_v14 = vrot.slane %v75_v8, 4 }
  0x95   :  { %v243_v15 = vadd.f32 %v242_v10, %v241_v63  ;;  %v88_v63 = vld [vmem:[%s837_s3 + $0x18] sm:$0xff] }
  0x96   :  { %v77_v19 = vadd.f32 %v76_v14, %v75_v8 }
  0x97   :  { %v244_v21 = vrot.slane %v243_v15, 2 }
  0x98   :  { %v78_v24 = vrot.slane %v77_v19, 2 }
  0x99   :  { %v245_v25 = vadd.f32 %v244_v21, %v243_v15 }
  0x9a   :  { %v79_v27 = vadd.f32 %v78_v24, %v77_v19 }
  0x9b   :  { %v246_v29 = vrot.slane %v245_v25, 1 }
  0x9c   :  { %v80_v32 = vrot.slane %v79_v27, 1 }
  0x9d   :  { %v247_v34 = vadd.f32 %v246_v29, %v245_v25  ;;  %v425_v29 = vmov 0  }
  0x9e   :  { %v81_v42 = vadd.f32 %v80_v32, %v79_v27  ;;  %392 = vset.pattern.permute.xlu0 %v425_v29  ;;  %391 = vset.pattern.permute.xlu2 %v425_v29  ;;  %v108_v32 = vld [vmem:[%s838_s4 + $0x10] sm:$0xff] }
  0x9f   :  { %v249_v45 = vadd.f32 %v248_v41, %v247_v34  ;;  %390 = vset.pattern.permute.xlu1 %v425_v29  ;;  %v107_v34 = vld [vmem:[%s838_s4 + $0x8] sm:$0xff] }
  0xa0   :  { %v83_v44 = vadd.f32 %v82_v35, %v81_v42  ;;  %v106_v35 = vld [vmem:[%s838_s4] sm:$0xff] }
  0xa1   :  { %v250_v55 = vmax.f32 %v249_v45, 0.0 }
  0xa2   :  { %v84_v47 = vmax.f32 %v83_v44, 0.0 }
  0xa3   :  { %v255_v62 = vperm.slane %v250_v55, 0 }
  0xa4   :  { %v89_v54 = vperm.slane %v84_v47, 0 }
  0xa5   :  { %v257_v3 = vmul.f32 %v255_v62, %v86_v50  ;;  %v256_v8 = vmul.f32 %v255_v62, %v85_v52  ;;  %v259_v21 = vmul.f32 %v255_v62, %v88_v63  ;;  %v258_v24 = vmul.f32 %v255_v62, %v87_v49 }
  0xa6   :  { %v92_v56 = vmul.f32 %v89_v54, %v87_v49  ;;  %v91_v57 = vmul.f32 %v89_v54, %v86_v50  ;;  %v90_v58 = vmul.f32 %v89_v54, %v85_v52  ;;  %v93_v10 = vmul.f32 %v89_v54, %v88_v63 }
  0xa7   :  { %v263_v14 = vsel %vm68_vm0, %v257_v3, 0.0  ;;  %v260_v15 = vsel %vm68_vm0, %v256_v8, 0.0  ;;  %v269_v25 = vsel %vm68_vm0, %v259_v21, 0.0  ;;  %v266_v27 = vsel %vm68_vm0, %v258_v24, 0.0 }
  0xa8   :  { %v100_v59 = vsel %vm68_vm0, %v92_v56, 0.0  ;;  %v97_v60 = vsel %vm68_vm0, %v91_v57, 0.0  ;;  %v94_v61 = vsel %vm68_vm0, %v90_v58, 0.0  ;;  %v103_v19 = vsel %vm68_vm0, %v93_v10, 0.0  ;;  %v109_v58 = vld [vmem:[%s838_s4 + $0x18] sm:$0xff] }
  0xa9   :  { %101 = vadd.xlane.f32.xlu1 %v100_v59  ;;  %98 = vadd.xlane.f32.xlu0 %v97_v60 }
  0xaa   :  { %95 = vadd.xlane.f32.xlu2 %v94_v61 }
  0xb1   :  { %264 = vadd.xlane.f32.xlu1 %v263_v14  ;;  %261 = vadd.xlane.f32.xlu0 %v260_v15 }
  0xb2   :  { %104 = vadd.xlane.f32.xlu2 %v103_v19 }
  0xb9   :  { %270 = vadd.xlane.f32.xlu0 %v269_v25 }
  0xba   :  { %267 = vadd.xlane.f32.xlu2 %v266_v27 }
 0x11c   :  { %v102_v41 = vpop.xlane.xlu1 %101  ;;  %v99_v42 = vpop.xlane.xlu0 %98 }
 0x11d   :  { %v112_v44 = vadd.f32 %v108_v32, %v102_v41  ;;  %v111_v45 = vadd.f32 %v107_v34, %v99_v42  ;;  %v96_v47 = vpop.xlane.xlu2 %95 }
 0x11e   :  { %v110_v49 = vadd.f32 %v106_v35, %v96_v47 }
 0x11f   :  { %v116_v50 = vsub.f32 0.0, %v112_v44  ;;  %v115_v52 = vsub.f32 0.0, %v111_v45 }
 0x120   :  { %v114_v54 = vsub.f32 0.0, %v110_v49 }
 0x121   :  { %v122_v55 = vmul.f32 1.442695, %v116_v50  ;;  %v120_v56 = vmul.f32 1.442695, %v115_v52 }
 0x122   :  { %v118_v57 = vmul.f32 1.442695, %v114_v54 }
 0x123   :  { %393 = vpow2.f32 %v122_v55 }
 0x124   :  { %395 = vpow2.f32 %v120_v56  ;;  %v262_v59 = vpop.xlane.xlu0 %261  ;;  %v265_v60 = vpop.xlane.xlu1 %264 }
 0x125   :  { %397 = vpow2.f32 %v118_v57  ;;  %v276_v61 = vadd.f32 %v262_v59, %v106_v35  ;;  %v105_v62 = vpop.xlane.xlu2 %104  ;;  %v277_v8 = vadd.f32 %v265_v60, %v107_v34 }
 0x126   :  { %v113_v63 = vadd.f32 %v109_v58, %v105_v62 }
 0x127   :  { %v280_v3 = vsub.f32 0.0, %v276_v61  ;;  %v281_v29 = vsub.f32 0.0, %v277_v8 }
 0x128   :  { %v117_v10 = vsub.f32 0.0, %v113_v63 }
 0x129   :  { %v394_v14 = vpop.eup %393  ;;  %v284_v25 = vmul.f32 1.442695, %v280_v3  ;;  %v286_v45 = vmul.f32 1.442695, %v281_v29 }
 0x12a   :  { %v396_v15 = vpop.eup %395  ;;  %v128_v19 = vadd.f32 1.0, %v394_v14  ;;  %v124_v41 = vmul.f32 1.442695, %v117_v10 }
 0x12b   :  { %v398_v21 = vpop.eup %397  ;;  %v127_v24 = vadd.f32 1.0, %v396_v15 }
 0x12c   :  { %399 = vrcp.f32 %v128_v19  ;;  %v126_v27 = vadd.f32 1.0, %v398_v21  ;;  %v271_v42 = vpop.xlane.xlu0 %270 }
 0x12d   :  { %401 = vrcp.f32 %v127_v24  ;;  %v268_v44 = vpop.xlane.xlu2 %267  ;;  %v279_v34 = vadd.f32 %v271_v42, %v109_v58 }
 0x12e   :  { %403 = vrcp.f32 %v126_v27  ;;  %v278_v35 = vadd.f32 %v268_v44, %v108_v32 }
 0x12f   :  { %405 = vpow2.f32 %v284_v25  ;;  %v283_v55 = vsub.f32 0.0, %v279_v34 }
 0x130   :  { %407 = vpow2.f32 %v124_v41  ;;  %v282_v47 = vsub.f32 0.0, %v278_v35 }
 0x131   :  { %409 = vpow2.f32 %v286_v45  ;;  %v290_v32 = vmul.f32 1.442695, %v283_v55 }
 0x132   :  { %v400_v49 = vpop.eup %399  ;;  %v288_v50 = vmul.f32 1.442695, %v282_v47 }
 0x133   :  { %v402_v52 = vpop.eup %401  ;;  %146 = vperm.xlu0 %392, %v400_v49  }
 0x134   :  { %v404_v54 = vpop.eup %403  ;;  %141 = vperm.xlu2 %391, %v402_v52   ;;  %411 = vpow2.f32 %v288_v50 }
 0x135   :  { %v406_v56 = vpop.eup %405  ;;  %136 = vperm.xlu1 %390, %v404_v54  }
 0x136   :  { %v408_v57 = vpop.eup %407  ;;  %v292_v59 = vadd.f32 1.0, %v406_v56 }
 0x137   :  { %v129_v60 = vadd.f32 1.0, %v408_v57  ;;  %v410_v61 = vpop.eup %409 }
 0x138   :  { %413 = vrcp.f32 %v292_v59  ;;  %v293_v63 = vadd.f32 1.0, %v410_v61 }
 0x139   :  { %415 = vrcp.f32 %v129_v60 }
 0x13a   :  { %v412_v58 = vpop.eup %411  ;;  %417 = vpow2.f32 %v290_v32 }
 0x13b   :  { %v294_v62 = vadd.f32 1.0, %v412_v58 }
 0x13d   :  { %419 = vrcp.f32 %v294_v62 }
 0x13e   :  { %v414_v3 = vpop.eup %413  ;;  %421 = vrcp.f32 %v293_v63 }
 0x13f   :  { %v416_v8 = vpop.eup %415  ;;  %302 = vperm.xlu1 %390, %v414_v3  }
 0x140   :  { %151 = vperm.xlu2 %391, %v416_v8   ;;  %v418_v10 = vpop.eup %417 }
 0x141   :  { %v295_v15 = vadd.f32 1.0, %v418_v10 }
 0x143   :  { %v420_v14 = vpop.eup %419  ;;  %423 = vrcp.f32 %v295_v15 }
 0x144   :  { %v422_v19 = vpop.eup %421 }
 0x147   :  { %312 = vperm.xlu1 %390, %v420_v14  }
 0x148   :  { %307 = vperm.xlu2 %391, %v422_v19  }
 0x149   :  { %v424_v21 = vpop.eup %423 }
 0x150   :  { %317 = vperm.xlu2 %391, %v424_v21  }
 0x18e   :  { %v142_v24 = vpop.permute.xlu2 %141 }
 0x18f   :  { %v158_v25 = vmul.f32 %v142_v24, %v545_v22  ;;  %v159_v27 = vmul.f32 %v142_v24, %v550_v23  ;;  %v160_v29 = vmul.f32 %v142_v24, %v557_v26  ;;  %v161_v41 = vmul.f32 %v142_v24, %v599_v38 }
 0x191   :  { %174 = vst [vmem:[%s839_s5 + $0x20] sm:$0xff] %v158_v25 }
 0x192   :  { %175 = vst [vmem:[%s839_s5 + $0x28] sm:$0xff] %v159_v27 }
 0x193   :  { %176 = vst [vmem:[%s839_s5 + $0x30] sm:$0xff] %v160_v29 }
 0x194   :  { %177 = vst [vmem:[%s839_s5 + $0x38] sm:$0xff] %v161_v41 }
 0x19a   :  { %v152_v22 = vpop.permute.xlu2 %151 }
 0x19b   :  { %v166_v23 = vmul.f32 %v152_v22, %v604_v39  ;;  %v167_v26 = vmul.f32 %v152_v22, %v609_v40  ;;  %v168_v38 = vmul.f32 %v152_v22, %v631_v48  ;;  %v169_v42 = vmul.f32 %v152_v22, %v644_v53 }
 0x19d   :  { %182 = vst [vmem:[%s839_s5 + $0x60] sm:$0xff] %v166_v23 }
 0x19e   :  { %183 = vst [vmem:[%s839_s5 + $0x68] sm:$0xff] %v167_v26 }
 0x19f   :  { %184 = vst [vmem:[%s839_s5 + $0x70] sm:$0xff] %v168_v38 }
 0x1a0   :  { %185 = vst [vmem:[%s839_s5 + $0x78] sm:$0xff] %v169_v42 }
 0x1a2   :  { %v308_v39 = vpop.permute.xlu2 %307 }
 0x1a3   :  { %v324_v40 = vmul.f32 %v522_v16, %v308_v39  ;;  %v325_v48 = vmul.f32 %v527_v17, %v308_v39  ;;  %v326_v53 = vmul.f32 %v532_v18, %v308_v39  ;;  %v327_v44 = vmul.f32 %v581_v33, %v308_v39 }
 0x1a5   :  { %377 = vst [vmem:[%s839_s5 + $0xa0] sm:$0xff] %v324_v40  ;;  %v147_v35 = vpop.permute.xlu0 %146 }
 0x1a6   :  { %378 = vst [vmem:[%s839_s5 + $0xa8] sm:$0xff] %v325_v48  ;;  %v162_v45 = vmul.f32 %v147_v35, %v498_v9  ;;  %v163_v34 = vmul.f32 %v147_v35, %v509_v12  ;;  %v164_v16 = vmul.f32 %v147_v35, %v514_v13  ;;  %v165_v18 = vmul.f32 %v147_v35, %v538_v20 }
 0x1a7   :  { %379 = vst [vmem:[%s839_s5 + $0xb0] sm:$0xff] %v326_v53  ;;  %v137_v17 = vpop.permute.xlu1 %136 }
 0x1a8   :  { %380 = vst [vmem:[%s839_s5 + $0xb8] sm:$0xff] %v327_v44  ;;  %v154_v9 = vmul.f32 %v137_v17, %v476_v4  ;;  %v155_v12 = vmul.f32 %v137_v17, %v481_v5  ;;  %v156_v33 = vmul.f32 %v137_v17, %v491_v7  ;;  %v157_v20 = vmul.f32 %v137_v17, %v504_v11 }
 0x1a9   :  { %178 = vst [vmem:[%s839_s5 + $0x40] sm:$0xff] %v162_v45 }
 0x1aa   :  { %179 = vst [vmem:[%s839_s5 + $0x48] sm:$0xff] %v163_v34  ;;  %v318_v13 = vpop.permute.xlu2 %317 }
 0x1ab   :  { %180 = vst [vmem:[%s839_s5 + $0x50] sm:$0xff] %v164_v16  ;;  %v332_v4 = vmul.f32 %v589_v36, %v318_v13  ;;  %v333_v5 = vmul.f32 %v594_v37, %v318_v13  ;;  %v334_v7 = vmul.f32 %v624_v46, %v318_v13  ;;  %v335_v11 = vmul.f32 %v638_v51, %v318_v13 }
 0x1ac   :  { %181 = vst [vmem:[%s839_s5 + $0x58] sm:$0xff] %v165_v18 }
 0x1ad   :  { %170 = vst [vmem:[%s839_s5] sm:$0xff] %v154_v9 }
 0x1ae   :  { %171 = vst [vmem:[%s839_s5 + $0x8] sm:$0xff] %v155_v12 }
 0x1af   :  { %172 = vst [vmem:[%s839_s5 + $0x10] sm:$0xff] %v156_v33 }
 0x1b0   :  { %173 = vst [vmem:[%s839_s5 + $0x18] sm:$0xff] %v157_v20 }
 0x1b1   :  { %385 = vst [vmem:[%s839_s5 + $0xe0] sm:$0xff] %v332_v4  ;;  %v303_v36 = vpop.permute.xlu1 %302 }
 0x1b2   :  { %386 = vst [vmem:[%s839_s5 + $0xe8] sm:$0xff] %v333_v5  ;;  %v320_v37 = vmul.f32 %v459_v0, %v303_v36  ;;  %v321_v47 = vmul.f32 %v464_v1, %v303_v36  ;;  %v322_v46 = vmul.f32 %v469_v2, %v303_v36  ;;  %v323_v51 = vmul.f32 %v486_v6, %v303_v36 }
 0x1b3   :  { %387 = vst [vmem:[%s839_s5 + $0xf0] sm:$0xff] %v334_v7 }
 0x1b4   :  { %388 = vst [vmem:[%s839_s5 + $0xf8] sm:$0xff] %v335_v11 }
 0x1b5   :  { %373 = vst [vmem:[%s839_s5 + $0x80] sm:$0xff] %v320_v37 }
 0x1b6   :  { %374 = vst [vmem:[%s839_s5 + $0x88] sm:$0xff] %v321_v47 }
 0x1b7   :  { %375 = vst [vmem:[%s839_s5 + $0x90] sm:$0xff] %v322_v46 }
 0x1b8   :  { %376 = vst [vmem:[%s839_s5 + $0x98] sm:$0xff] %v323_v51 }
 0x1b9   :  { %v313_v0 = vpop.permute.xlu1 %312 }
 0x1ba   :  { %v328_v1 = vmul.f32 %v564_v28, %v313_v0  ;;  %v329_v2 = vmul.f32 %v570_v30, %v313_v0  ;;  %v330_v6 = vmul.f32 %v575_v31, %v313_v0  ;;  %v331_v49 = vmul.f32 %v616_v43, %v313_v0 }
 0x1bc   :  { %381 = vst [vmem:[%s839_s5 + $0xc0] sm:$0xff] %v328_v1 }
 0x1bd   :  { %382 = vst [vmem:[%s839_s5 + $0xc8] sm:$0xff] %v329_v2 }
 0x1be   :  { %383 = vst [vmem:[%s839_s5 + $0xd0] sm:$0xff] %v330_v6 }
 0x1bf   :  { %384 = vst [vmem:[%s839_s5 + $0xd8] sm:$0xff] %v331_v49 }

</bundles_post_ra>
